<compile_context>
chip_gen: v7x
topology: tpu7x:2x2x1
jax: 0.10.0
libtpu: 0.0.40
codegen_flags: <defaults>
</compile_context>

<pallas_src>
import jax
import jax.numpy as jnp
from jax.experimental import pallas as pl
from jax.experimental.pallas import tpu as pltpu


def _init_embed_kernel(x_ref, wb_ref, o_ref):
    # x_ref : (br, k)        folded thresholds tile
    # wb_ref: (k + 1, k*E)   rows 0..k-1 = block-diagonal weight, row k = bias
    # o_ref : (br, k*E)      lane-dense output tile
    k = x_ref.shape[1]
    x = x_ref[...].astype(jnp.float32)
    w = wb_ref[0:k, :].astype(jnp.float32)          # (k, k*E)
    b = wb_ref[k:k + 1, :].astype(jnp.float32)      # (1, k*E)
    if k == 1:
        # Degenerate K=1 "matmul" -> VPU broadcast FMA (MXU would waste slots).
        acc = x * w                                  # (br, 1)*(1, E) -> (br, E)
    else:
        # K=k, N=k*E=128 matmul: a sane MXU shape.
        acc = jnp.dot(x, w, preferred_element_type=jnp.float32)
    o_ref[...] = (acc + b).astype(o_ref.dtype)


def _round_up(x, m):
    return ((x + m - 1) // m) * m


def charging_init_embedding(thresholds, weight, bias, *, block_rows=1024):
    """thresholds: (B, N, 1); weight: (E, 1); bias: (E,) -> (B, N, E).

    block_rows counts rows of the *folded* layout (each folded row covers
    k = 128 // E original rows when E < 128). With E=32 the default tile is
    1024 x 128 f32 = 512 KiB, well within VMEM on v5e/v6e/v7x even double
    buffered; raise/lower per-generation if E is large.
    """
    B, N, node_dim = thresholds.shape
    assert node_dim == 1
    E = weight.shape[0]
    M = B * N
    dtype = thresholds.dtype

    # Fold factor: make the output lane dim 128-wide when E < 128.
    if E < 128 and 128 % E == 0:
        k = 128 // E
    else:
        k = 1
    lanes = k * E

    # Folded row count, tile size (multiple of 8 sublanes), and padding so any
    # (B, N) works (no divisibility assert).
    Mf = pl.cdiv(M, k)
    br = _round_up(min(block_rows, _round_up(Mf, 8)), 8)
    br = max(br, 8)
    Mf_pad = _round_up(Mf, br)
    M_pad = Mf_pad * k

    x = thresholds.reshape(M)
    if M_pad != M:
        x = jnp.pad(x, (0, M_pad - M))
    x_folded = x.reshape(Mf_pad, k)

    # Resident (k+1, k*E) slab: block-diagonal weight + tiled bias row.
    w_col = weight.reshape(E).astype(dtype)                    # (E,)
    eye = jnp.eye(k, dtype=dtype)                              # (k, k)
    w_block = (eye[:, :, None] * w_col[None, None, :]).reshape(k, lanes)
    b_row = jnp.tile(bias.reshape(1, E).astype(dtype), (1, k))  # (1, k*E)
    wb = jnp.concatenate([w_block, b_row], axis=0)              # (k+1, k*E)

    grid = (Mf_pad // br,)
    out = pl.pallas_call(
        _init_embed_kernel,
        out_shape=jax.ShapeDtypeStruct((Mf_pad, lanes), dtype),
        grid_spec=pltpu.PrefetchScalarGridSpec(
            num_scalar_prefetch=0,
            grid=grid,
            in_specs=[
                pl.BlockSpec((br, k), lambda i: (i, 0)),          # thresholds
                pl.BlockSpec((k + 1, lanes), lambda i: (0, 0)),   # weight+bias
            ],
            out_specs=pl.BlockSpec((br, lanes), lambda i: (i, 0)),
        ),
        compiler_params=pltpu.CompilerParams(
            dimension_semantics=("parallel",),
        ),
    )(x_folded, wb)

    # Row-major (Mf_pad, k*E) == row-major (M_pad, E): plain reshape, drop pad.
    out = out.reshape(M_pad, E)[:M]
    return out.reshape(B, N, E)


def _reference(thresholds, weight, bias):
    # Pure-JAX reference of nn.Linear(1, E): x @ W^T + b
    return jnp.einsum("bnd,ed->bne", thresholds, weight) + bias


if __name__ == "__main__":
    B, N, E = 2, 8, 32
    key = jax.random.PRNGKey(0)
    k_x, k_w, k_b = jax.random.split(key, 3)

    # nn.Linear(1, E, bias=True) parameter shapes.
    weight = jax.random.uniform(k_w, (E, 1), jnp.float32, minval=-1.0, maxval=1.0)
    bias = jax.random.uniform(k_b, (E,), jnp.float32, minval=-1.0, maxval=1.0)

    # td['thresholds'] : (B, N, 1)
    thresholds = jax.random.uniform(k_x, (B, N, 1), jnp.float32)

    out = charging_init_embedding(thresholds, weight, bias)
    out = jax.block_until_ready(out)

    ref = _reference(thresholds, weight, bias)
    assert out.shape == (B, N, E)
    assert jnp.allclose(out, ref, atol=1e-5, rtol=1e-5)

    print("KERNEL_OK")
</pallas_src>

<mosaic_0001>
module attributes {stable_mosaic.version = 11 : i64} {
  func.func @_init_embed_kernel(%arg0: i32, %arg1: memref<8x4xf32, #tpu.memory_space<vmem>>, %arg2: memref<5x128xf32, #tpu.memory_space<vmem>>, %arg3: memref<8x128xf32, #tpu.memory_space<vmem>>) attributes {dimension_semantics = [#tpu.dimension_semantics<parallel>], iteration_bounds = array<i64: 1>, scalar_prefetch = 0 : i64, scratch_operands = 0 : i64, tpu.core_type = #tpu.core_type<tc>, window_params = [{transform_indices = @transform_0, window_bounds = array<i64: 8, 4>}, {pipeline_mode = #tpu.pipeline_mode<synchronous>, transform_indices = @transform_1, window_bounds = array<i64: 5, 128>}, {transform_indices = @transform_2, window_bounds = array<i64: 8, 128>}]} {
    %c0 = arith.constant 0 : index
    %c0_0 = arith.constant 0 : index
    %0 = vector.load %arg1[%c0, %c0_0] : memref<8x4xf32, #tpu.memory_space<vmem>>, vector<8x4xf32>
    %c0_1 = arith.constant 0 : index
    %c0_2 = arith.constant 0 : index
    %1 = vector.load %arg2[%c0_1, %c0_2] : memref<5x128xf32, #tpu.memory_space<vmem>>, vector<4x128xf32>
    %c4 = arith.constant 4 : index
    %c0_3 = arith.constant 0 : index
    %2 = vector.load %arg2[%c4, %c0_3] : memref<5x128xf32, #tpu.memory_space<vmem>>, vector<1x128xf32>
    %cst = arith.constant dense<0.000000e+00> : vector<8x128xf32>
    %3 = tpu.matmul %0, %1, %cst {dimension_numbers = #tpu.dot_dimension_numbers<[1], [0], [0], [1], [0, 0, 1, 1], [], []>} : vector<8x4xf32>, vector<4x128xf32>, vector<8x128xf32> -> vector<8x128xf32>
    %4 = vector.broadcast %2 : vector<1x128xf32> to vector<8x128xf32>
    %5 = arith.addf %3, %4 : vector<8x128xf32>
    %c0_4 = arith.constant 0 : index
    %c0_5 = arith.constant 0 : index
    %6 = vector.load %arg3[%c0_4, %c0_5] : memref<8x128xf32, #tpu.memory_space<vmem>>, vector<8x128xf32>
    tpu.vector_store %arg3[%c0_4, %c0_5], %5 {strides = array<i32>} : memref<8x128xf32, #tpu.memory_space<vmem>>, vector<8x128xf32>,
    return
  }
  func.func @transform_0(%arg0: i32) -> (i32, i32) {
    %c0_i32 = arith.constant 0 : i32
    %c0_i32_0 = arith.constant 0 : i32
    return %arg0, %c0_i32 : i32, i32
  }
  func.func @transform_1(%arg0: i32) -> (i32, i32) {
    %c0_i32 = arith.constant 0 : i32
    %c0_i32_0 = arith.constant 0 : i32
    %c0_i32_1 = arith.constant 0 : i32
    return %c0_i32, %c0_i32_0 : i32, i32
  }
  func.func @transform_2(%arg0: i32) -> (i32, i32) {
    %c0_i32 = arith.constant 0 : i32
    %c0_i32_0 = arith.constant 0 : i32
    return %arg0, %c0_i32 : i32, i32
  }
}

</mosaic_0001>

<bundles_post_ra>
// kernel: tpu_custom_call.1
= control target key start
LH: loop header
LB: loop body
LE: loop exit
PB: predicated region body
PF: predicated region fallthrough
CT: control target
= control target key end

     0   :  { %vm23_vm0 = vcmask 1043456   ;;  %v149_v2 = vmov 0.0   ;;  %vm150_vm1 = vmmov 0   ;;  %vm19_vm2 = vcmask 31744   ;;  %s188_s0 = inlined_call_operand.vmem [shape: f32[8,4], index: 0, kind: input, shape index: {}]   ;;  %s189_s1 = inlined_call_operand.vmem [shape: f32[5,128], index: 1, kind: input, shape index: {}]   ;;  %s190_s2 = inlined_call_operand.hbm [shape: f32[8,128], index: 2, kind: output, shape index: {}]  }
   0x1   :  { %v13_v0 = vld [vmem:[%s189_s1] sm:$0xf]  ;;  %117 = vmatprep.subr.mxu0 %v149_v2  ;;  %119 = vmatprep.mubr.msk.f32.mxu0 %vm150_vm1, %v149_v2 }
   0x2   :  { %v12_v1 = vld [vmem:[%s188_s0] sm:$0xff] }
   0x3   :  { %7 = vsyncpa [#allocation3], 0  ;;  %118 = vmatpush3.msk.msra.mxu0 %vm23_vm0, %v13_v0  ;;  %v112_v3 = vld [vmem:[%s189_s1 + $0x4] ss:$0 sm:$0xff]  ;;  %s151_s15 = smov [#allocation2]  }
   0x4   :  { %120 = vmatmul.mubr.msk.f32.vlgmr.msra.gmra.mrb[0].mxu0 %vm19_vm2, %v12_v1  ;;  %s104_s16 = sshll.u32 %s151_s15, 4  ;;  %s105_s16 = int_to_ptr.vmem [resolvable:$true] %s104_s16 }
   0x5   :  { %s125_s0 = scalar_lea.vmem %s105_s16, 128  ;;  %p130_p1 = scmp.lt.s32.totalorder %s105_s16, %s105_s16 }
   0x6   :  { %p126_p0 = scmp.ne.s32.totalorder %s105_s16, %s125_s0  ;;  %p131_p2 = scmp.lt.s32.totalorder %s125_s0, %s125_s0 }
   0x8   :  { %p132_p3 = por %p131_p2, %p130_p1 }
   0xa   :  { %p133_p4 = pnand %p132_p3, %p126_p0 }
  0xd7   :  { %v93_v4 = vpop.f32.mrb[0].mxu0 }
  0xd8   :  { %v94_v5 = vadd.f32 %v112_v3, %v93_v4  ;;  %v121_v6 = vpop.f32.mrb[1].mxu0 }
  0xda   :  { %97 = vst [vmem:[#allocation2] sm:$0xff] %v94_v5 }
  0xdb   :  { %136 = shalt.err (!%p133_p4)
}
  0xdc   :  { %s137_s19 = scalar_lea.hbm %s190_s2, 128 }
  0xdd   :  { %p138_p5 = scmp.ne.s32.totalorder %s190_s2, %s137_s19  ;;  %p141_p6 = scmp.lt.u32.totalorder %s137_s19, %s190_s2 }
  0xdf   :  { %p143_p7 = pnand %p141_p6, %p138_p5 }
  0xe1   :  { %146 = shalt.err (!%p143_p7)
}
  0xe2   :  { %107 = dma.vmem_to_hbm [thread:$0]  %s105_s16, 128, %s190_s2, [#allocation3]  }
  0xe3   :  { %147 = dma.done.wait [#allocation3], 128  }
  0xe4   :  { %148 = vsyncadd [#allocation3], 4294967168 }
  0xe5   :  { %111 = vsyncpa [#allocation3], 1 }

</bundles_post_ra>
